<compile_context>
chip_gen: v5e
topology: v5e:2x2
jax: 0.10.0
libtpu: 0.0.40
codegen_flags: <defaults>
</compile_context>

<pallas_src>
import functools

import jax
import jax.numpy as jnp
from jax import lax
from jax.experimental import pallas as pl
from jax.experimental.pallas import tpu as pltpu  # noqa: F401  (kept for parity)


def sin_lstm_kernel(x_ref, wih_ref, whh_ref, b_ref,
                    fc0w_ref, fc0b_ref, gamma_ref, beta_ref,
                    fc1w_ref, fc1b_ref, out_ref, *, seq_len):
    T = seq_len
    B = x_ref.shape[0]
    H = whh_ref.shape[0]
    OUT = out_ref.shape[1]

    wih = wih_ref[...]                                      # (D, 4H)
    whh = whh_ref[...]                                      # (H, 4H)
    bias = jnp.broadcast_to(b_ref[...], (B, 4 * H))         # hoisted broadcast

    # Gate-activation constants (hoisted out of the loop).  Lanes [2H, 3H) are
    # the cell candidate 'g' (tanh); everything else is sigmoid.  With
    # tanh(x) = 2*sigmoid(2x) - 1 the whole (B, 4H) gate block needs a single
    # EUP pass per step plus one FMA-form VPU pass.
    lane = lax.broadcasted_iota(jnp.int32, (B, 4 * H), 1)
    is_g = (lane >= 2 * H) & (lane < 3 * H)
    pre_scale = jnp.where(is_g, jnp.float32(2.0), jnp.float32(1.0))
    post_bias = jnp.where(is_g, jnp.float32(-1.0), jnp.float32(0.0))

    # ---- Phase 1: per-step input projections (independent of the recurrence,
    # so they schedule off the serial critical path). -------------------------
    gates_x = [
        jnp.dot(x_ref[:, t, :], wih, preferred_element_type=jnp.float32) + bias
        for t in range(T)
    ]

    # ---- Phase 2: serial recurrence (static unroll; T is small here). -------
    # For larger T (>~32) switch to lax.fori_loop(..., unroll=k) over a stacked
    # gates_x to bound vreg live ranges.
    h = jnp.zeros((B, H), jnp.float32)
    c = jnp.zeros((B, H), jnp.float32)
    for t in range(T):
        g_pre = gates_x[t] + jnp.dot(h, whh,
                                     preferred_element_type=jnp.float32)
        s = jax.nn.sigmoid(g_pre * pre_scale)               # one EUP pass
        act = s * pre_scale + post_bias                     # FMA, no select
        i_g = act[:, 0 * H:1 * H]
        f_g = act[:, 1 * H:2 * H]
        g_g = act[:, 2 * H:3 * H]
        o_g = act[:, 3 * H:4 * H]
        c = f_g * c + i_g * g_g
        h = o_g * jnp.tanh(c)

    # ---- Phase 3: fc0 -> BatchNorm1d (training-mode batch stats) -> ReLU ----
    z = (jnp.dot(h, fc0w_ref[...], preferred_element_type=jnp.float32)
         + fc0b_ref[...])                                   # (B, H//2)
    mean = jnp.mean(z, axis=0, keepdims=True)
    diff = z - mean
    var = jnp.mean(diff * diff, axis=0, keepdims=True)      # biased variance
    zn = diff * lax.rsqrt(var + 1e-5) * gamma_ref[...] + beta_ref[...]
    a = jnp.maximum(zn, 0.0)                                # ReLU

    # ---- Phase 4: fc1 (lane-padded weight, exact-width store) ---------------
    out = jnp.dot(a, fc1w_ref[...], preferred_element_type=jnp.float32)
    out_ref[...] = (out[:, :OUT] + fc1b_ref[...]).astype(out_ref.dtype)


def sin_lstm_forward(x_btd, params):
    B, T, D = x_btd.shape
    OUT = params["fc1b"].shape[1]

    kernel = functools.partial(sin_lstm_kernel, seq_len=T)
    return pl.pallas_call(
        kernel,
        out_shape=jax.ShapeDtypeStruct((B, OUT), jnp.float32),
    )(x_btd.astype(jnp.float32),
      params["wih_t"], params["whh_t"], params["b"],
      params["fc0w_t"], params["fc0b"], params["gamma"], params["beta"],
      params["fc1w_t_pad"], params["fc1b"])


def sin_lstm_reference(x_btd, params):
    """Pure-JAX reference matching the PyTorch forward."""
    x = jnp.transpose(x_btd.astype(jnp.float32), (1, 0, 2))    # (T, B, D)
    B = x.shape[1]
    H = params["whh_t"].shape[0]

    def step(carry, xt):
        h, c = carry
        gates = xt @ params["wih_t"] + h @ params["whh_t"] + params["b"]
        i_g = jax.nn.sigmoid(gates[:, 0 * H:1 * H])
        f_g = jax.nn.sigmoid(gates[:, 1 * H:2 * H])
        g_g = jnp.tanh(gates[:, 2 * H:3 * H])
        o_g = jax.nn.sigmoid(gates[:, 3 * H:4 * H])
        c = f_g * c + i_g * g_g
        h = o_g * jnp.tanh(c)
        return (h, c), None

    h0 = jnp.zeros((B, H), jnp.float32)
    c0 = jnp.zeros((B, H), jnp.float32)
    (h, _), _ = lax.scan(step, (h0, c0), x)

    z = h @ params["fc0w_t"] + params["fc0b"]
    mean = jnp.mean(z, axis=0, keepdims=True)
    var = jnp.mean((z - mean) ** 2, axis=0, keepdims=True)
    zn = (z - mean) / jnp.sqrt(var + 1e-5) * params["gamma"] + params["beta"]
    a = jnp.maximum(zn, 0.0)
    return a @ params["fc1w_t"] + params["fc1b"]


def make_params(key, input_dim, hidden_dim, output_dim):
    h2 = hidden_dim // 2
    ks = jax.random.split(key, 8)
    u = lambda k, shape, s: jax.random.uniform(k, shape, jnp.float32, -s, s)
    s_lstm = 1.0 / jnp.sqrt(hidden_dim)
    s_fc0 = 1.0 / jnp.sqrt(hidden_dim)
    s_fc1 = 1.0 / jnp.sqrt(h2)
    fc1w_t = u(ks[6], (h2, output_dim), s_fc1)
    outp = ((output_dim + 127) // 128) * 128   # one-time lane padding (perf review)
    return {
        "wih_t": u(ks[0], (input_dim, 4 * hidden_dim), s_lstm),   # W_ih^T
        "whh_t": u(ks[1], (hidden_dim, 4 * hidden_dim), s_lstm),  # W_hh^T
        "b": (u(ks[2], (1, 4 * hidden_dim), s_lstm)
              + u(ks[3], (1, 4 * hidden_dim), s_lstm)),           # b_ih + b_hh
        "fc0w_t": u(ks[4], (hidden_dim, h2), s_fc0),
        "fc0b": u(ks[5], (1, h2), s_fc0),
        "gamma": jnp.ones((1, h2), jnp.float32),                  # BN init
        "beta": jnp.zeros((1, h2), jnp.float32),
        "fc1w_t": fc1w_t,                                         # reference
        "fc1w_t_pad": jnp.pad(fc1w_t, ((0, 0), (0, outp - output_dim))),
        "fc1b": u(ks[7], (1, output_dim), s_fc1),
    }


if __name__ == "__main__":
    B, T, D = 2, 8, 16          # batch, seq_len, input_dim
    H, OUT = 32, 1              # lstm_hidden_dim, output_dim

    key = jax.random.PRNGKey(0)
    pkey, xkey = jax.random.split(key)
    params = make_params(pkey, D, H, OUT)
    x = jax.random.normal(xkey, (B, T, D), jnp.float32)

    fwd = jax.jit(sin_lstm_forward)
    out = jax.block_until_ready(fwd(x, params))
    ref = jax.block_until_ready(sin_lstm_reference(x, params))

    assert out.shape == (B, OUT), out.shape
    assert jnp.allclose(out, ref, atol=1e-4, rtol=1e-4), (out, ref)
    print("KERNEL_OK")
</pallas_src>

<mosaic_0001>
module attributes {stable_mosaic.version = 11 : i64} {
  func.func @sin_lstm_kernel(%arg0: memref<2x8x16xf32, #tpu.memory_space<vmem>>, %arg1: memref<16x128xf32, #tpu.memory_space<vmem>>, %arg2: memref<32x128xf32, #tpu.memory_space<vmem>>, %arg3: memref<1x128xf32, #tpu.memory_space<vmem>>, %arg4: memref<32x16xf32, #tpu.memory_space<vmem>>, %arg5: memref<1x16xf32, #tpu.memory_space<vmem>>, %arg6: memref<1x16xf32, #tpu.memory_space<vmem>>, %arg7: memref<1x16xf32, #tpu.memory_space<vmem>>, %arg8: memref<16x128xf32, #tpu.memory_space<vmem>>, %arg9: memref<1x1xf32, #tpu.memory_space<vmem>>, %arg10: memref<2x1xf32, #tpu.memory_space<vmem>>) attributes {dimension_semantics = [], scalar_prefetch = 0 : i64, scratch_operands = 0 : i64, tpu.core_type = #tpu.core_type<tc>} {
    %c0 = arith.constant 0 : index
    %c0_0 = arith.constant 0 : index
    %0 = vector.load %arg1[%c0, %c0_0] : memref<16x128xf32, #tpu.memory_space<vmem>>, vector<16x128xf32>
    %c0_1 = arith.constant 0 : index
    %c0_2 = arith.constant 0 : index
    %1 = vector.load %arg2[%c0_1, %c0_2] : memref<32x128xf32, #tpu.memory_space<vmem>>, vector<32x128xf32>
    %c0_3 = arith.constant 0 : index
    %c0_4 = arith.constant 0 : index
    %2 = vector.load %arg3[%c0_3, %c0_4] : memref<1x128xf32, #tpu.memory_space<vmem>>, vector<1x128xf32>
    %3 = vector.shape_cast %2 : vector<1x128xf32> to vector<1x128xf32>
    %4 = vector.broadcast %3 : vector<1x128xf32> to vector<2x128xf32>
    %5 = tpu.iota {dimensions = array<i32: 1>} : vector<2x128xi32>
    %c64_i32 = arith.constant 64 : i32
    %6 = vector.broadcast %c64_i32 : i32 to vector<2x128xi32>
    %7 = arith.cmpi sge, %5, %6 : vector<2x128xi32>
    %c96_i32 = arith.constant 96 : i32
    %8 = vector.broadcast %c96_i32 : i32 to vector<2x128xi32>
    %9 = arith.cmpi slt, %5, %8 : vector<2x128xi32>
    %10 = arith.andi %7, %9 : vector<2x128xi1>
    %cst = arith.constant 2.000000e+00 : f32
    %cst_5 = arith.constant 1.000000e+00 : f32
    %11 = vector.broadcast %cst : f32 to vector<2x128xf32>
    %12 = vector.broadcast %cst_5 : f32 to vector<2x128xf32>
    %13 = arith.select %10, %11, %12 : vector<2x128xi1>, vector<2x128xf32>
    %cst_6 = arith.constant -1.000000e+00 : f32
    %cst_7 = arith.constant 0.000000e+00 : f32
    %14 = vector.broadcast %cst_6 : f32 to vector<2x128xf32>
    %15 = vector.broadcast %cst_7 : f32 to vector<2x128xf32>
    %16 = arith.select %10, %14, %15 : vector<2x128xi1>, vector<2x128xf32>
    %c0_8 = arith.constant 0 : index
    %c0_9 = arith.constant 0 : index
    %c0_10 = arith.constant 0 : index
    %17 = vector.load %arg0[%c0_8, %c0_9, %c0_10] : memref<2x8x16xf32, #tpu.memory_space<vmem>>, vector<2x1x16xf32>
    %18 = vector.shape_cast %17 : vector<2x1x16xf32> to vector<2x16xf32>
    %cst_11 = arith.constant dense<0.000000e+00> : vector<2x128xf32>
    %19 = tpu.matmul %18, %0, %cst_11 {dimension_numbers = #tpu.dot_dimension_numbers<[1], [0], [0], [1], [0, 0, 1, 1], [], []>} : vector<2x16xf32>, vector<16x128xf32>, vector<2x128xf32> -> vector<2x128xf32>
    %20 = arith.addf %19, %4 : vector<2x128xf32>
    %c0_12 = arith.constant 0 : index
    %c1 = arith.constant 1 : index
    %c0_13 = arith.constant 0 : index
    %21 = vector.load %arg0[%c0_12, %c1, %c0_13] : memref<2x8x16xf32, #tpu.memory_space<vmem>>, vector<2x1x16xf32>
    %22 = vector.shape_cast %21 : vector<2x1x16xf32> to vector<2x16xf32>
    %cst_14 = arith.constant dense<0.000000e+00> : vector<2x128xf32>
    %23 = tpu.matmul %22, %0, %cst_14 {dimension_numbers = #tpu.dot_dimension_numbers<[1], [0], [0], [1], [0, 0, 1, 1], [], []>} : vector<2x16xf32>, vector<16x128xf32>, vector<2x128xf32> -> vector<2x128xf32>
    %24 = arith.addf %23, %4 : vector<2x128xf32>
    %c0_15 = arith.constant 0 : index
    %c2 = arith.constant 2 : index
    %c0_16 = arith.constant 0 : index
    %25 = vector.load %arg0[%c0_15, %c2, %c0_16] : memref<2x8x16xf32, #tpu.memory_space<vmem>>, vector<2x1x16xf32>
    %26 = vector.shape_cast %25 : vector<2x1x16xf32> to vector<2x16xf32>
    %cst_17 = arith.constant dense<0.000000e+00> : vector<2x128xf32>
    %27 = tpu.matmul %26, %0, %cst_17 {dimension_numbers = #tpu.dot_dimension_numbers<[1], [0], [0], [1], [0, 0, 1, 1], [], []>} : vector<2x16xf32>, vector<16x128xf32>, vector<2x128xf32> -> vector<2x128xf32>
    %28 = arith.addf %27, %4 : vector<2x128xf32>
    %c0_18 = arith.constant 0 : index
    %c3 = arith.constant 3 : index
    %c0_19 = arith.constant 0 : index
    %29 = vector.load %arg0[%c0_18, %c3, %c0_19] : memref<2x8x16xf32, #tpu.memory_space<vmem>>, vector<2x1x16xf32>
    %30 = vector.shape_cast %29 : vector<2x1x16xf32> to vector<2x16xf32>
    %cst_20 = arith.constant dense<0.000000e+00> : vector<2x128xf32>
    %31 = tpu.matmul %30, %0, %cst_20 {dimension_numbers = #tpu.dot_dimension_numbers<[1], [0], [0], [1], [0, 0, 1, 1], [], []>} : vector<2x16xf32>, vector<16x128xf32>, vector<2x128xf32> -> vector<2x128xf32>
    %32 = arith.addf %31, %4 : vector<2x128xf32>
    %c0_21 = arith.constant 0 : index
    %c4 = arith.constant 4 : index
    %c0_22 = arith.constant 0 : index
    %33 = vector.load %arg0[%c0_21, %c4, %c0_22] : memref<2x8x16xf32, #tpu.memory_space<vmem>>, vector<2x1x16xf32>
    %34 = vector.shape_cast %33 : vector<2x1x16xf32> to vector<2x16xf32>
    %cst_23 = arith.constant dense<0.000000e+00> : vector<2x128xf32>
    %35 = tpu.matmul %34, %0, %cst_23 {dimension_numbers = #tpu.dot_dimension_numbers<[1], [0], [0], [1], [0, 0, 1, 1], [], []>} : vector<2x16xf32>, vector<16x128xf32>, vector<2x128xf32> -> vector<2x128xf32>
    %36 = arith.addf %35, %4 : vector<2x128xf32>
    %c0_24 = arith.constant 0 : index
    %c5 = arith.constant 5 : index
    %c0_25 = arith.constant 0 : index
    %37 = vector.load %arg0[%c0_24, %c5, %c0_25] : memref<2x8x16xf32, #tpu.memory_space<vmem>>, vector<2x1x16xf32>
    %38 = vector.shape_cast %37 : vector<2x1x16xf32> to vector<2x16xf32>
    %cst_26 = arith.constant dense<0.000000e+00> : vector<2x128xf32>
    %39 = tpu.matmul %38, %0, %cst_26 {dimension_numbers = #tpu.dot_dimension_numbers<[1], [0], [0], [1], [0, 0, 1, 1], [], []>} : vector<2x16xf32>, vector<16x128xf32>, vector<2x128xf32> -> vector<2x128xf32>
    %40 = arith.addf %39, %4 : vector<2x128xf32>
    %c0_27 = arith.constant 0 : index
    %c6 = arith.constant 6 : index
    %c0_28 = arith.constant 0 : index
    %41 = vector.load %arg0[%c0_27, %c6, %c0_28] : memref<2x8x16xf32, #tpu.memory_space<vmem>>, vector<2x1x16xf32>
    %42 = vector.shape_cast %41 : vector<2x1x16xf32> to vector<2x16xf32>
    %cst_29 = arith.constant dense<0.000000e+00> : vector<2x128xf32>
    %43 = tpu.matmul %42, %0, %cst_29 {dimension_numbers = #tpu.dot_dimension_numbers<[1], [0], [0], [1], [0, 0, 1, 1], [], []>} : vector<2x16xf32>, vector<16x128xf32>, vector<2x128xf32> -> vector<2x128xf32>
    %44 = arith.addf %43, %4 : vector<2x128xf32>
    %c0_30 = arith.constant 0 : index
    %c7 = arith.constant 7 : index
    %c0_31 = arith.constant 0 : index
    %45 = vector.load %arg0[%c0_30, %c7, %c0_31] : memref<2x8x16xf32, #tpu.memory_space<vmem>>, vector<2x1x16xf32>
    %46 = vector.shape_cast %45 : vector<2x1x16xf32> to vector<2x16xf32>
    %cst_32 = arith.constant dense<0.000000e+00> : vector<2x128xf32>
    %47 = tpu.matmul %46, %0, %cst_32 {dimension_numbers = #tpu.dot_dimension_numbers<[1], [0], [0], [1], [0, 0, 1, 1], [], []>} : vector<2x16xf32>, vector<16x128xf32>, vector<2x128xf32> -> vector<2x128xf32>
    %48 = arith.addf %47, %4 : vector<2x128xf32>
    %cst_33 = arith.constant 0.000000e+00 : f32
    %49 = vector.broadcast %cst_33 : f32 to vector<2x32xf32>
    %cst_34 = arith.constant 0.000000e+00 : f32
    %50 = vector.broadcast %cst_34 : f32 to vector<2x32xf32>
    %cst_35 = arith.constant dense<0.000000e+00> : vector<2x128xf32>
    %51 = tpu.matmul %49, %1, %cst_35 {dimension_numbers = #tpu.dot_dimension_numbers<[1], [0], [0], [1], [0, 0, 1, 1], [], []>} : vector<2x32xf32>, vector<32x128xf32>, vector<2x128xf32> -> vector<2x128xf32>
    %52 = arith.addf %20, %51 : vector<2x128xf32>
    %53 = arith.mulf %52, %13 : vector<2x128xf32>
    %54 = arith.negf %53 : vector<2x128xf32>
    %55 = math.exp %54 : vector<2x128xf32>
    %cst_36 = arith.constant 1.000000e+00 : f32
    %56 = vector.broadcast %cst_36 : f32 to vector<2x128xf32>
    %57 = arith.addf %56, %55 : vector<2x128xf32>
    %58 = arith.divf %56, %57 : vector<2x128xf32>
    %59 = arith.mulf %58, %13 : vector<2x128xf32>
    %60 = arith.addf %59, %16 : vector<2x128xf32>
    %61 = vector.extract_strided_slice %60 {offsets = [0, 0], sizes = [2, 32], strides = [1, 1]} : vector<2x128xf32> to vector<2x32xf32>
    %62 = vector.extract_strided_slice %60 {offsets = [0, 32], sizes = [2, 32], strides = [1, 1]} : vector<2x128xf32> to vector<2x32xf32>
    %63 = vector.extract_strided_slice %60 {offsets = [0, 64], sizes = [2, 32], strides = [1, 1]} : vector<2x128xf32> to vector<2x32xf32>
    %64 = vector.extract_strided_slice %60 {offsets = [0, 96], sizes = [2, 32], strides = [1, 1]} : vector<2x128xf32> to vector<2x32xf32>
    %65 = arith.mulf %62, %50 : vector<2x32xf32>
    %66 = arith.mulf %61, %63 : vector<2x32xf32>
    %67 = arith.addf %65, %66 : vector<2x32xf32>
    %68 = math.tanh %67 : vector<2x32xf32>
    %69 = arith.mulf %64, %68 : vector<2x32xf32>
    %cst_37 = arith.constant dense<0.000000e+00> : vector<2x128xf32>
    %70 = tpu.matmul %69, %1, %cst_37 {dimension_numbers = #tpu.dot_dimension_numbers<[1], [0], [0], [1], [0, 0, 1, 1], [], []>} : vector<2x32xf32>, vector<32x128xf32>, vector<2x128xf32> -> vector<2x128xf32>
    %71 = arith.addf %24, %70 : vector<2x128xf32>
    %72 = arith.mulf %71, %13 : vector<2x128xf32>
    %73 = arith.negf %72 : vector<2x128xf32>
    %74 = math.exp %73 : vector<2x128xf32>
    %cst_38 = arith.constant 1.000000e+00 : f32
    %75 = vector.broadcast %cst_38 : f32 to vector<2x128xf32>
    %76 = arith.addf %75, %74 : vector<2x128xf32>
    %77 = arith.divf %75, %76 : vector<2x128xf32>
    %78 = arith.mulf %77, %13 : vector<2x128xf32>
    %79 = arith.addf %78, %16 : vector<2x128xf32>
    %80 = vector.extract_strided_slice %79 {offsets = [0, 0], sizes = [2, 32], strides = [1, 1]} : vector<2x128xf32> to vector<2x32xf32>
    %81 = vector.extract_strided_slice %79 {offsets = [0, 32], sizes = [2, 32], strides = [1, 1]} : vector<2x128xf32> to vector<2x32xf32>
    %82 = vector.extract_strided_slice %79 {offsets = [0, 64], sizes = [2, 32], strides = [1, 1]} : vector<2x128xf32> to vector<2x32xf32>
    %83 = vector.extract_strided_slice %79 {offsets = [0, 96], sizes = [2, 32], strides = [1, 1]} : vector<2x128xf32> to vector<2x32xf32>
    %84 = arith.mulf %81, %67 : vector<2x32xf32>
    %85 = arith.mulf %80, %82 : vector<2x32xf32>
    %86 = arith.addf %84, %85 : vector<2x32xf32>
    %87 = math.tanh %86 : vector<2x32xf32>
    %88 = arith.mulf %83, %87 : vector<2x32xf32>
    %cst_39 = arith.constant dense<0.000000e+00> : vector<2x128xf32>
    %89 = tpu.matmul %88, %1, %cst_39 {dimension_numbers = #tpu.dot_dimension_numbers<[1], [0], [0], [1], [0, 0, 1, 1], [], []>} : vector<2x32xf32>, vector<32x128xf32>, vector<2x128xf32> -> vector<2x128xf32>
    %90 = arith.addf %28, %89 : vector<2x128xf32>
    %91 = arith.mulf %90, %13 : vector<2x128xf32>
    %92 = arith.negf %91 : vector<2x128xf32>
    %93 = math.exp %92 : vector<2x128xf32>
    %cst_40 = arith.constant 1.000000e+00 : f32
    %94 = vector.broadcast %cst_40 : f32 to vector<2x128xf32>
    %95 = arith.addf %94, %93 : vector<2x128xf32>
    %96 = arith.divf %94, %95 : vector<2x128xf32>
    %97 = arith.mulf %96, %13 : vector<2x128xf32>
    %98 = arith.addf %97, %16 : vector<2x128xf32>
    %99 = vector.extract_strided_slice %98 {offsets = [0, 0], sizes = [2, 32], strides = [1, 1]} : vector<2x128xf32> to vector<2x32xf32>
    %100 = vector.extract_strided_slice %98 {offsets = [0, 32], sizes = [2, 32], strides = [1, 1]} : vector<2x128xf32> to vector<2x32xf32>
    %101 = vector.extract_strided_slice %98 {offsets = [0, 64], sizes = [2, 32], strides = [1, 1]} : vector<2x128xf32> to vector<2x32xf32>
    %102 = vector.extract_strided_slice %98 {offsets = [0, 96], sizes = [2, 32], strides = [1, 1]} : vector<2x128xf32> to vector<2x32xf32>
    %103 = arith.mulf %100, %86 : vector<2x32xf32>
    %104 = arith.mulf %99, %101 : vector<2x32xf32>
    %105 = arith.addf %103, %104 : vector<2x32xf32>
    %106 = math.tanh %105 : vector<2x32xf32>
    %107 = arith.mulf %102, %106 : vector<2x32xf32>
    %cst_41 = arith.constant dense<0.000000e+00> : vector<2x128xf32>
    %108 = tpu.matmul %107, %1, %cst_41 {dimension_numbers = #tpu.dot_dimension_numbers<[1], [0], [0], [1], [0, 0, 1, 1], [], []>} : vector<2x32xf32>, vector<32x128xf32>, vector<2x128xf32> -> vector<2x128xf32>
    %109 = arith.addf %32, %108 : vector<2x128xf32>
    %110 = arith.mulf %109, %13 : vector<2x128xf32>
    %111 = arith.negf %110 : vector<2x128xf32>
    %112 = math.exp %111 : vector<2x128xf32>
    %cst_42 = arith.constant 1.000000e+00 : f32
    %113 = vector.broadcast %cst_42 : f32 to vector<2x128xf32>
    %114 = arith.addf %113, %112 : vector<2x128xf32>
    %115 = arith.divf %113, %114 : vector<2x128xf32>
    %116 = arith.mulf %115, %13 : vector<2x128xf32>
    %117 = arith.addf %116, %16 : vector<2x128xf32>
    %118 = vector.extract_strided_slice %117 {offsets = [0, 0], sizes = [2, 32], strides = [1, 1]} : vector<2x128xf32> to vector<2x32xf32>
    %119 = vector.extract_strided_slice %117 {offsets = [0, 32], sizes = [2, 32], strides = [1, 1]} : vector<2x128xf32> to vector<2x32xf32>
    %120 = vector.extract_strided_slice %117 {offsets = [0, 64], sizes = [2, 32], strides = [1, 1]} : vector<2x128xf32> to vector<2x32xf32>
    %121 = vector.extract_strided_slice %117 {offsets = [0, 96], sizes = [2, 32], strides = [1, 1]} : vector<2x128xf32> to vector<2x32xf32>
    %122 = arith.mulf %119, %105 : vector<2x32xf32>
    %123 = arith.mulf %118, %120 : vector<2x32xf32>
    %124 = arith.addf %122, %123 : vector<2x32xf32>
    %125 = math.tanh %124 : vector<2x32xf32>
    %126 = arith.mulf %121, %125 : vector<2x32xf32>
    %cst_43 = arith.constant dense<0.000000e+00> : vector<2x128xf32>
    %127 = tpu.matmul %126, %1, %cst_43 {dimension_numbers = #tpu.dot_dimension_numbers<[1], [0], [0], [1], [0, 0, 1, 1], [], []>} : vector<2x32xf32>, vector<32x128xf32>, vector<2x128xf32> -> vector<2x128xf32>
    %128 = arith.addf %36, %127 : vector<2x128xf32>
    %129 = arith.mulf %128, %13 : vector<2x128xf32>
    %130 = arith.negf %129 : vector<2x128xf32>
    %131 = math.exp %130 : vector<2x128xf32>
    %cst_44 = arith.constant 1.000000e+00 : f32
    %132 = vector.broadcast %cst_44 : f32 to vector<2x128xf32>
    %133 = arith.addf %132, %131 : vector<2x128xf32>
    %134 = arith.divf %132, %133 : vector<2x128xf32>
    %135 = arith.mulf %134, %13 : vector<2x128xf32>
    %136 = arith.addf %135, %16 : vector<2x128xf32>
    %137 = vector.extract_strided_slice %136 {offsets = [0, 0], sizes = [2, 32], strides = [1, 1]} : vector<2x128xf32> to vector<2x32xf32>
    %138 = vector.extract_strided_slice %136 {offsets = [0, 32], sizes = [2, 32], strides = [1, 1]} : vector<2x128xf32> to vector<2x32xf32>
    %139 = vector.extract_strided_slice %136 {offsets = [0, 64], sizes = [2, 32], strides = [1, 1]} : vector<2x128xf32> to vector<2x32xf32>
    %140 = vector.extract_strided_slice %136 {offsets = [0, 96], sizes = [2, 32], strides = [1, 1]} : vector<2x128xf32> to vector<2x32xf32>
    %141 = arith.mulf %138, %124 : vector<2x32xf32>
    %142 = arith.mulf %137, %139 : vector<2x32xf32>
    %143 = arith.addf %141, %142 : vector<2x32xf32>
    %144 = math.tanh %143 : vector<2x32xf32>
    %145 = arith.mulf %140, %144 : vector<2x32xf32>
    %cst_45 = arith.constant dense<0.000000e+00> : vector<2x128xf32>
    %146 = tpu.matmul %145, %1, %cst_45 {dimension_numbers = #tpu.dot_dimension_numbers<[1], [0], [0], [1], [0, 0, 1, 1], [], []>} : vector<2x32xf32>, vector<32x128xf32>, vector<2x128xf32> -> vector<2x128xf32>
    %147 = arith.addf %40, %146 : vector<2x128xf32>
    %148 = arith.mulf %147, %13 : vector<2x128xf32>
    %149 = arith.negf %148 : vector<2x128xf32>
    %150 = math.exp %149 : vector<2x128xf32>
    %cst_46 = arith.constant 1.000000e+00 : f32
    %151 = vector.broadcast %cst_46 : f32 to vector<2x128xf32>
    %152 = arith.addf %151, %150 : vector<2x128xf32>
    %153 = arith.divf %151, %152 : vector<2x128xf32>
    %154 = arith.mulf %153, %13 : vector<2x128xf32>
    %155 = arith.addf %154, %16 : vector<2x128xf32>
    %156 = vector.extract_strided_slice %155 {offsets = [0, 0], sizes = [2, 32], strides = [1, 1]} : vector<2x128xf32> to vector<2x32xf32>
    %157 = vector.extract_strided_slice %155 {offsets = [0, 32], sizes = [2, 32], strides = [1, 1]} : vector<2x128xf32> to vector<2x32xf32>
    %158 = vector.extract_strided_slice %155 {offsets = [0, 64], sizes = [2, 32], strides = [1, 1]} : vector<2x128xf32> to vector<2x32xf32>
    %159 = vector.extract_strided_slice %155 {offsets = [0, 96], sizes = [2, 32], strides = [1, 1]} : vector<2x128xf32> to vector<2x32xf32>
    %160 = arith.mulf %157, %143 : vector<2x32xf32>
    %161 = arith.mulf %156, %158 : vector<2x32xf32>
    %162 = arith.addf %160, %161 : vector<2x32xf32>
    %163 = math.tanh %162 : vector<2x32xf32>
    %164 = arith.mulf %159, %163 : vector<2x32xf32>
    %cst_47 = arith.constant dense<0.000000e+00> : vector<2x128xf32>
    %165 = tpu.matmul %164, %1, %cst_47 {dimension_numbers = #tpu.dot_dimension_numbers<[1], [0], [0], [1], [0, 0, 1, 1], [], []>} : vector<2x32xf32>, vector<32x128xf32>, vector<2x128xf32> -> vector<2x128xf32>
    %166 = arith.addf %44, %165 : vector<2x128xf32>
    %167 = arith.mulf %166, %13 : vector<2x128xf32>
    %168 = arith.negf %167 : vector<2x128xf32>
    %169 = math.exp %168 : vector<2x128xf32>
    %cst_48 = arith.constant 1.000000e+00 : f32
    %170 = vector.broadcast %cst_48 : f32 to vector<2x128xf32>
    %171 = arith.addf %170, %169 : vector<2x128xf32>
    %172 = arith.divf %170, %171 : vector<2x128xf32>
    %173 = arith.mulf %172, %13 : vector<2x128xf32>
    %174 = arith.addf %173, %16 : vector<2x128xf32>
    %175 = vector.extract_strided_slice %174 {offsets = [0, 0], sizes = [2, 32], strides = [1, 1]} : vector<2x128xf32> to vector<2x32xf32>
    %176 = vector.extract_strided_slice %174 {offsets = [0, 32], sizes = [2, 32], strides = [1, 1]} : vector<2x128xf32> to vector<2x32xf32>
    %177 = vector.extract_strided_slice %174 {offsets = [0, 64], sizes = [2, 32], strides = [1, 1]} : vector<2x128xf32> to vector<2x32xf32>
    %178 = vector.extract_strided_slice %174 {offsets = [0, 96], sizes = [2, 32], strides = [1, 1]} : vector<2x128xf32> to vector<2x32xf32>
    %179 = arith.mulf %176, %162 : vector<2x32xf32>
    %180 = arith.mulf %175, %177 : vector<2x32xf32>
    %181 = arith.addf %179, %180 : vector<2x32xf32>
    %182 = math.tanh %181 : vector<2x32xf32>
    %183 = arith.mulf %178, %182 : vector<2x32xf32>
    %cst_49 = arith.constant dense<0.000000e+00> : vector<2x128xf32>
    %184 = tpu.matmul %183, %1, %cst_49 {dimension_numbers = #tpu.dot_dimension_numbers<[1], [0], [0], [1], [0, 0, 1, 1], [], []>} : vector<2x32xf32>, vector<32x128xf32>, vector<2x128xf32> -> vector<2x128xf32>
    %185 = arith.addf %48, %184 : vector<2x128xf32>
    %186 = arith.mulf %185, %13 : vector<2x128xf32>
    %187 = arith.negf %186 : vector<2x128xf32>
    %188 = math.exp %187 : vector<2x128xf32>
    %cst_50 = arith.constant 1.000000e+00 : f32
    %189 = vector.broadcast %cst_50 : f32 to vector<2x128xf32>
    %190 = arith.addf %189, %188 : vector<2x128xf32>
    %191 = arith.divf %189, %190 : vector<2x128xf32>
    %192 = arith.mulf %191, %13 : vector<2x128xf32>
    %193 = arith.addf %192, %16 : vector<2x128xf32>
    %194 = vector.extract_strided_slice %193 {offsets = [0, 0], sizes = [2, 32], strides = [1, 1]} : vector<2x128xf32> to vector<2x32xf32>
    %195 = vector.extract_strided_slice %193 {offsets = [0, 32], sizes = [2, 32], strides = [1, 1]} : vector<2x128xf32> to vector<2x32xf32>
    %196 = vector.extract_strided_slice %193 {offsets = [0, 64], sizes = [2, 32], strides = [1, 1]} : vector<2x128xf32> to vector<2x32xf32>
    %197 = vector.extract_strided_slice %193 {offsets = [0, 96], sizes = [2, 32], strides = [1, 1]} : vector<2x128xf32> to vector<2x32xf32>
    %198 = arith.mulf %195, %181 : vector<2x32xf32>
    %199 = arith.mulf %194, %196 : vector<2x32xf32>
    %200 = arith.addf %198, %199 : vector<2x32xf32>
    %201 = math.tanh %200 : vector<2x32xf32>
    %202 = arith.mulf %197, %201 : vector<2x32xf32>
    %c0_51 = arith.constant 0 : index
    %c0_52 = arith.constant 0 : index
    %203 = vector.load %arg4[%c0_51, %c0_52] : memref<32x16xf32, #tpu.memory_space<vmem>>, vector<32x16xf32>
    %cst_53 = arith.constant dense<0.000000e+00> : vector<2x16xf32>
    %204 = tpu.matmul %202, %203, %cst_53 {dimension_numbers = #tpu.dot_dimension_numbers<[1], [0], [0], [1], [0, 0, 1, 1], [], []>} : vector<2x32xf32>, vector<32x16xf32>, vector<2x16xf32> -> vector<2x16xf32>
    %c0_54 = arith.constant 0 : index
    %c0_55 = arith.constant 0 : index
    %205 = vector.load %arg5[%c0_54, %c0_55] : memref<1x16xf32, #tpu.memory_space<vmem>>, vector<1x16xf32>
    %206 = vector.broadcast %205 : vector<1x16xf32> to vector<2x16xf32>
    %207 = arith.addf %204, %206 : vector<2x16xf32>
    %cst_56 = arith.constant dense<0.000000e+00> : vector<16xf32>
    %208 = vector.multi_reduction <add>, %207, %cst_56 [0] : vector<2x16xf32> to vector<16xf32>
    %209 = vector.shape_cast %208 : vector<16xf32> to vector<1x16xf32>
    %cst_57 = arith.constant 2.000000e+00 : f32
    %210 = vector.broadcast %cst_57 : f32 to vector<1x16xf32>
    %211 = arith.divf %209, %210 : vector<1x16xf32>
    %212 = vector.broadcast %211 : vector<1x16xf32> to vector<2x16xf32>
    %213 = arith.subf %207, %212 : vector<2x16xf32>
    %214 = arith.mulf %213, %213 : vector<2x16xf32>
    %cst_58 = arith.constant dense<0.000000e+00> : vector<16xf32>
    %215 = vector.multi_reduction <add>, %214, %cst_58 [0] : vector<2x16xf32> to vector<16xf32>
    %216 = vector.shape_cast %215 : vector<16xf32> to vector<1x16xf32>
    %cst_59 = arith.constant 2.000000e+00 : f32
    %217 = vector.broadcast %cst_59 : f32 to vector<1x16xf32>
    %218 = arith.divf %216, %217 : vector<1x16xf32>
    %cst_60 = arith.constant 9.99999974E-6 : f32
    %219 = vector.broadcast %cst_60 : f32 to vector<1x16xf32>
    %220 = arith.addf %218, %219 : vector<1x16xf32>
    %221 = math.rsqrt %220 : vector<1x16xf32>
    %222 = vector.broadcast %221 : vector<1x16xf32> to vector<2x16xf32>
    %223 = arith.mulf %213, %222 : vector<2x16xf32>
    %c0_61 = arith.constant 0 : index
    %c0_62 = arith.constant 0 : index
    %224 = vector.load %arg6[%c0_61, %c0_62] : memref<1x16xf32, #tpu.memory_space<vmem>>, vector<1x16xf32>
    %225 = vector.broadcast %224 : vector<1x16xf32> to vector<2x16xf32>
    %226 = arith.mulf %223, %225 : vector<2x16xf32>
    %c0_63 = arith.constant 0 : index
    %c0_64 = arith.constant 0 : index
    %227 = vector.load %arg7[%c0_63, %c0_64] : memref<1x16xf32, #tpu.memory_space<vmem>>, vector<1x16xf32>
    %228 = vector.broadcast %227 : vector<1x16xf32> to vector<2x16xf32>
    %229 = arith.addf %226, %228 : vector<2x16xf32>
    %cst_65 = arith.constant 0.000000e+00 : f32
    %230 = vector.broadcast %cst_65 : f32 to vector<2x16xf32>
    %231 = arith.maximumf %229, %230 : vector<2x16xf32>
    %c0_66 = arith.constant 0 : index
    %c0_67 = arith.constant 0 : index
    %232 = vector.load %arg8[%c0_66, %c0_67] : memref<16x128xf32, #tpu.memory_space<vmem>>, vector<16x128xf32>
    %cst_68 = arith.constant dense<0.000000e+00> : vector<2x128xf32>
    %233 = tpu.matmul %231, %232, %cst_68 {dimension_numbers = #tpu.dot_dimension_numbers<[1], [0], [0], [1], [0, 0, 1, 1], [], []>} : vector<2x16xf32>, vector<16x128xf32>, vector<2x128xf32> -> vector<2x128xf32>
    %234 = vector.extract_strided_slice %233 {offsets = [0, 0], sizes = [2, 1], strides = [1, 1]} : vector<2x128xf32> to vector<2x1xf32>
    %c0_69 = arith.constant 0 : index
    %c0_70 = arith.constant 0 : index
    %235 = vector.load %arg9[%c0_69, %c0_70] : memref<1x1xf32, #tpu.memory_space<vmem>>, vector<1x1xf32>
    %236 = vector.broadcast %235 : vector<1x1xf32> to vector<2x1xf32>
    %237 = arith.addf %234, %236 : vector<2x1xf32>
    %c0_71 = arith.constant 0 : index
    %c0_72 = arith.constant 0 : index
    %238 = vector.load %arg10[%c0_71, %c0_72] : memref<2x1xf32, #tpu.memory_space<vmem>>, vector<2x1xf32>
    tpu.vector_store %arg10[%c0_71, %c0_72], %237 {strides = array<i32>} : memref<2x1xf32, #tpu.memory_space<vmem>>, vector<2x1xf32>,
    return
  }
}

</mosaic_0001>

<bundles_post_ra>
// kernel: sin_lstm_forward.1
= control target key start
LH: loop header
LB: loop body
LE: loop exit
PB: predicated region body
PF: predicated region fallthrough
CT: control target
= control target key end

     0   :  { %s1411_s0 = inlined_call_operand.vmem [shape: f32[2,8,16], index: 0, kind: input, shape index: {}]   ;;  %s1412_s1 = inlined_call_operand.hbm [shape: f32[16,128], index: 1, kind: input, shape index: {}]   ;;  %s1413_s2 = inlined_call_operand.vmem [shape: f32[32,128], index: 2, kind: input, shape index: {}]   ;;  %s1414_s3 = inlined_call_operand.vmem [shape: f32[1,128], index: 3, kind: input, shape index: {}]   ;;  %s1415_s4 = inlined_call_operand.vmem [shape: f32[32,16], index: 4, kind: input, shape index: {}]   ;;  %s1416_s5 = inlined_call_operand.vmem [shape: f32[1,16], index: 5, kind: input, shape index: {}]   ;;  %s1417_s6 = inlined_call_operand.vmem [shape: f32[1,16], index: 6, kind: input, shape index: {}]   ;;  %s1418_s7 = inlined_call_operand.vmem [shape: f32[1,16], index: 7, kind: input, shape index: {}]   ;;  %s1419_s8 = inlined_call_operand.hbm [shape: f32[16,128], index: 8, kind: input, shape index: {}]   ;;  %s1420_s9 = inlined_call_operand.<no memory space> [shape: f32[1,1], index: 9, kind: input, shape index: {}]   ;;  %s1421_s10 = inlined_call_operand.vmem [shape: f32[2,1], index: 10, kind: output, shape index: {}]  }
   0x1   :  { %v15_v0 = vstv %s1420_s9 }
   0x2   :  { %16 = vst [vmem:[#allocation2] sm:$0x1] %v15_v0 }
   0x3   :  { %17 = vsyncpa [#allocation4], 0  ;;  %s25_s17 = sshll.u32 %s1412_s1, 4  ;;  %s26_s17 = int_to_ptr.hbm [resolvable:$true] %s25_s17 }
   0x4   :  { %18 = vsyncpa [#allocation6], 0  ;;  %s1094_s18 = smov [#allocation3]   ;;  %s50_s22 = sshll.u32 %s1419_s8, 4  ;;  %s51_s22 = int_to_ptr.hbm [resolvable:$true] %s50_s22 }
   0x5   :  { %s27_s19 = sshll.u32 %s1094_s18, 4  ;;  %s1095_s23 = smov 128   ;;  %s28_s19 = int_to_ptr.vmem [resolvable:$true] %s27_s19 }
   0x6   :  { %s1096_s24 = smov 8   ;;  %s1097_s9 = smov [#allocation5]  }
   0x7   :  { %33 = dma.hbm_to_vmem [thread:$0]  %s26_s17, 256, %s28_s19, [#allocation4], %s1095_s23, %s1095_s23, %s1096_s24  }
   0x8   :  { %s52_s25 = sshll.u32 %s1097_s9, 4  ;;  %s53_s25 = int_to_ptr.vmem [resolvable:$true] %s52_s25 }
   0x9   :  { %58 = dma.hbm_to_vmem [thread:$0]  %s51_s22, 256, %s53_s25, [#allocation6], %s1095_s23, %s1095_s23, %s1096_s24  }
   0xa   :  { %1090 = dma.done.wait [#allocation4], 256  }
   0xb   :  { %1091 = vsyncadd [#allocation4], 4294967040 }
   0xc   :  { %1092 = dma.done.wait [#allocation6], 256  }
   0xd   :  { %1093 = vsyncadd [#allocation6], 4294967040  ;;  %v70_v1 = vld [vmem:[#allocation3 + $0x8] sm:$0xff]  ;;  %v69_v2 = vld [vmem:[#allocation3] sm:$0xff]  ;;  %vm91_vm0 = vcmask 1041409   ;;  %vm93_vm1 = vcmask 130048   ;;  %v79_v17 = vlaneseq }
   0xe   :  { %110 = vmatpush.msra.mxu0 %v70_v1  ;;  %v86_v3 = vld [vmem:[%s1411_s0] sm:$0x1]  ;;  %v87_v4 = vld [vmem:[%s1411_s0 + $0x8] sm:$0x1]  ;;  %138 = vmatpush.msra.mxu1 %v70_v1  ;;  %v201_v6 = vld [vmem:[%s1411_s0 + $0xc] sm:$0x1] }
   0xf   :  { %v90_v5 = vrot.slane %v87_v4, 7  ;;  %166 = vmatpush.msra.mxu2 %v70_v1  ;;  %194 = vmatpush.msra.mxu3 %v70_v1  ;;  %v1179_v7 = vld [vmem:[%s1413_s2 + $0x18] sm:$0xff]  ;;  %v204_v9 = vrot.slane %v201_v6, 7  ;;  %v1186_v10 = vld [vmem:[%s1413_s2 + $0x10] sm:$0xff]  ;;  %v200_v11 = vld [vmem:[%s1411_s0 + $0x4] sm:$0x1] }
  0x10   :  { %111 = vmatpush.msra.mxu0 %v69_v2  ;;  %139 = vmatpush.msra.mxu1 %v69_v2  ;;  %v1195_v12 = vld [vmem:[%s1413_s2 + $0x8] sm:$0xff]  ;;  %v1203_v14 = vld [vmem:[%s1413_s2] sm:$0xff]  ;;  %v1098_v15 = vmov 0.0   ;;  %v80_v18 = vand.u32 127, %v79_v17  ;;  %v1099_v23 = vmov 1.0   ;;  %s1101_s21 = smov 32  }
  0x11   :  { %v92_v8 = vsel %vm91_vm0, %v90_v5, %v86_v3  ;;  %167 = vmatpush.msra.mxu2 %v69_v2  ;;  %195 = vmatpush.msra.mxu3 %v69_v2  ;;  %v205_v13 = vsel %vm91_vm0, %v204_v9, %v200_v11  ;;  %v1216_v20 = vld [vmem:[%s1414_s3] ss:$0 sm:$0xff]  ;;  %s1100_s3 = smov 64   ;;  %v116_v50 = vld [vmem:[%s1411_s0 + $0x1] sm:$0x1]  ;;  %vm312_vm9 = vcmask 261120  }
  0x12   :  { %222 = vmatpush.msrb.mxu0 %v70_v1  ;;  %250 = vmatpush.msrb.mxu1 %v70_v1  ;;  %vm81_vm2 = vcmp.ge.s32.totalorder %v80_v18, 64  ;;  %vm82_vm3 = vcmp.lt.s32.totalorder %v80_v18, 96  ;;  %v117_v51 = vld [vmem:[%s1411_s0 + $0x9] sm:$0x1]  ;;  %v229_v53 = vld [vmem:[%s1411_s0 + $0xd] sm:$0x1] }
  0x13   :  { %951 = vmatmul.msk.f32.vlgmr.msra.gmra.mxu0 %vm93_vm1, %v92_v8  ;;  %278 = vmatpush.msrb.mxu2 %v70_v1  ;;  %vm1218_vm4 = vmand %vm81_vm2, %vm82_vm3  ;;  %v120_v52 = vrot.slane %v117_v51, 7  ;;  %v232_v55 = vrot.slane %v229_v53, 7  ;;  %v228_v56 = vld [vmem:[%s1411_s0 + $0x5] sm:$0x1] }
  0x14   :  { %223 = vmatpush.msrb.mxu0 %v69_v2  ;;  %251 = vmatpush.msrb.mxu1 %v69_v2  ;;  %v1225_v24 = vsel %vm1218_vm4, 2.0, %v1099_v23  ;;  %v1230_v40 = vsel %vm1218_vm4, -1.0, %v1098_v15 }
  0x15   :  { %279 = vmatpush.msrb.mxu2 %v69_v2  ;;  %306 = vmatpush.msrb.mxu3 %v70_v1  ;;  %v121_v54 = vsel %vm91_vm0, %v120_v52, %v116_v50  ;;  %v233_v57 = vsel %vm91_vm0, %v232_v55, %v228_v56 }
  0x16   :  { %328 = vmatpush.msra.mxu0 %v1179_v7  ;;  %952 = vmatmul.msk.f32.vlgmr.msra.gmra.mxu1 %vm93_vm1, %v121_v54 }
  0x17   :  { %307 = vmatpush.msrb.mxu3 %v69_v2  ;;  %393 = vmatpush.msra.mxu1 %v1179_v7 }
  0x18   :  { %329 = vmatpush.msra.mxu0 %v1186_v10 }
  0x19   :  { %394 = vmatpush.msra.mxu1 %v1186_v10 }
  0x1a   :  { %330 = vmatpush.msra.mxu0 %v1195_v12 }
  0x1b   :  { %955 = vmatmul.msk.f32.vlgmr.msrb.gmra.mxu0 %vm93_vm1, %v205_v13  ;;  %395 = vmatpush.msra.mxu1 %v1195_v12 }
  0x1c   :  { %331 = vmatpush.msra.mxu0 %v1203_v14 }
  0x1d   :  { %396 = vmatpush.msra.mxu1 %v1203_v14 }
  0x1e   :  { %588 = vmatpush.msrb.mxu0 %v1179_v7  ;;  %956 = vmatmul.msk.f32.vlgmr.msrb.gmra.mxu1 %vm93_vm1, %v233_v57 }
  0x1f   :  { %653 = vmatpush.msrb.mxu1 %v1179_v7 }
  0x20   :  { %589 = vmatpush.msrb.mxu0 %v1186_v10 }
  0x21   :  { %654 = vmatpush.msrb.mxu1 %v1186_v10 }
  0x22   :  { %590 = vmatpush.msrb.mxu0 %v1195_v12 }
  0x23   :  { %332 = vmatmul.f32.vlgmr.msra.gmra.mxu0 %v1098_v15  ;;  %655 = vmatpush.msrb.mxu1 %v1195_v12 }
  0x24   :  { %591 = vmatpush.msrb.mxu0 %v1203_v14 }
  0x25   :  { %656 = vmatpush.msrb.mxu1 %v1203_v14 }
  0x90   :  { %v113_v16 = vpop.f32.mrf.mxu0 }
  0x91   :  { %v114_v22 = vadd.f32 %v1216_v20, %v113_v16 }
  0x93   :  { %v141_v61 = vpop.f32.mrf.mxu1 }
  0x94   :  { %v142_v63 = vadd.f32 %v1216_v20, %v141_v61 }
  0x98   :  { %v1211_v19 = vpop.f32.mrf.mxu0 }
  0x9b   :  { %v1263_v62 = vpop.f32.mrf.mxu1 }
  0xa0   :  { %v333_v25 = vpop.f32.mrf.mxu0 }
  0xa1   :  { %v336_v26 = vadd.f32 %v333_v25, %v114_v22 }
  0xa3   :  { %v337_v27 = vmul.f32 %v336_v26, %v1225_v24 }
  0xa5   :  { %v959_v28 = vmul.f32 -1.442695, %v337_v27 }
  0xa7   :  { %990 = vpow2.f32 %v959_v28 }
  0xad   :  { %v991_v29 = vpop.eup %990 }
  0xae   :  { %v341_v30 = vadd.f32 1.0, %v991_v29 }
  0xb0   :  { %992 = vrcp.f32 %v341_v30  ;;  %v353_v34 = vand.u32 2147483648, %v341_v30  ;;  %v351_v36 = vand.u32 2147483647, %v341_v30  ;;  %vm347_vm6 = vweird.f32 %v341_v30 }
  0xb2   :  { %v354_v38 = vor.u32 1.1754944e-38, %v353_v34  ;;  %vm352_vm8 = vcmp.eq.f32.partialorder %v351_v36, 8.507059e+37  ;;  %v257_v34 = vld [vmem:[%s1411_s0 + $0xe] sm:$0x1] }
  0xb3   :  { %v260_v36 = vrot.slane %v257_v34, 7 }
  0xb6   :  { %v993_v31 = vpop.eup %992 }
  0xb7   :  { %v343_v32 = vmul.f32 %v993_v31, %v341_v30  ;;  %vm348_vm5 = vweird.f32 %v993_v31 }
  0xb8   :  { %vm349_vm7 = vmor %vm347_vm6, %vm348_vm5 }
  0xb9   :  { %v344_v33 = vsub.f32 1.0, %v343_v32  ;;  %v145_v32 = vld [vmem:[%s1411_s0 + $0xa] sm:$0x1] }
  0xbb   :  { %v345_v35 = vmul.f32 %v993_v31, %v344_v33  ;;  %v148_v33 = vrot.slane %v145_v32, 7 }
  0xbd   :  { %v346_v37 = vadd.f32 %v993_v31, %v345_v35 }
  0xbf   :  { %v350_v39 = vsel %vm349_vm7, %v993_v31, %v346_v37  ;;  %v144_v31 = vld [vmem:[%s1411_s0 + $0x2] sm:$0x1]  ;;  %v256_v37 = vld [vmem:[%s1411_s0 + $0x6] sm:$0x1] }
  0xc0   :  { %v355_v41 = vsel %vm352_vm8, %v354_v38, %v350_v39  ;;  %v149_v35 = vsel %vm91_vm0, %v148_v33, %v144_v31  ;;  %v261_v38 = vsel %vm91_vm0, %v260_v36, %v256_v37 }
  0xc1   :  { %v357_v42 = vmul.f32 %v355_v41, %v1225_v24  ;;  %953 = vmatmul.msk.f32.vlgmr.msra.gmra.mxu2 %vm93_vm1, %v149_v35 }
  0xc2   :  { %458 = vmatpush.msra.mxu2 %v1179_v7 }
  0xc3   :  { %v358_v43 = vadd.f32 %v357_v42, %v1230_v40 }
  0xc4   :  { %459 = vmatpush.msra.mxu2 %v1186_v10 }
  0xc5   :  { %361 = vrot.lane.b32.xlu0 %v358_v43, %s1100_s3  ;;  %v359_v46 = vmul.f32 0.0, %v358_v43 }
  0xc6   :  { %460 = vmatpush.msra.mxu2 %v1195_v12 }
  0xc8   :  { %461 = vmatpush.msra.mxu2 %v1203_v14 }
  0xc9   :  { %957 = vmatmul.msk.f32.vlgmr.msrb.gmra.mxu2 %vm93_vm1, %v261_v38 }
  0xca   :  { %718 = vmatpush.msrb.mxu2 %v1179_v7 }
  0xcc   :  { %719 = vmatpush.msrb.mxu2 %v1186_v10 }
  0xce   :  { %720 = vmatpush.msrb.mxu2 %v1195_v12 }
  0xd0   :  { %721 = vmatpush.msrb.mxu2 %v1203_v14 }
 0x137   :  { %v362_v44 = vpop.permute.xlu0 %361 }
 0x138   :  { %v364_v45 = vmul.f32 %v362_v44, %v358_v43 }
 0x13a   :  { %366 = vrot.lane.b32.xlu0 %v364_v45, %s1101_s21 }
 0x1ac   :  { %v367_v47 = vpop.permute.xlu0 %366 }
 0x1ad   :  { %v369_v48 = vadd.f32 %v367_v47, %v359_v46 }
 0x1af   :  { %994 = vtanh.f32 %v369_v48 }
 0x1b5   :  { %v995_v49 = vpop.eup %994 }
 0x1b6   :  { %372 = vrot.lane.b32.xlu1 %v995_v49, %s1100_s3 }
 0x228   :  { %v373_v58 = vpop.permute.xlu1 %372 }
 0x229   :  { %v375_v59 = vmul.f32 %v373_v58, %v358_v43  ;;  %v169_v43 = vpop.f32.mrf.mxu2 }
 0x22a   :  { %v170_v45 = vadd.f32 %v1216_v20, %v169_v43 }
 0x22b   :  { %377 = vrot.lane.b32.xlu1 %v375_v59, %s1101_s21 }
 0x231   :  { %v1298_v44 = vpop.f32.mrf.mxu2 }
 0x29d   :  { %v378_v60 = vpop.permute.xlu1 %377 }
 0x29e   :  { %960 = vmatmul.msk.f32.vlgmr.msra.gmra.mxu1 %vm312_vm9, %v378_v60 }
 0x31b   :  { %v398_v0 = vpop.f32.mrf.mxu1 }
 0x31c   :  { %v401_v1 = vadd.f32 %v398_v0, %v142_v63 }
 0x31e   :  { %v402_v2 = vmul.f32 %v401_v1, %v1225_v24 }
 0x320   :  { %v961_v3 = vmul.f32 -1.442695, %v402_v2 }
 0x322   :  { %996 = vpow2.f32 %v961_v3 }
 0x328   :  { %v997_v4 = vpop.eup %996 }
 0x329   :  { %v406_v5 = vadd.f32 1.0, %v997_v4 }
 0x32b   :  { %998 = vrcp.f32 %v406_v5  ;;  %v418_v11 = vand.u32 2147483648, %v406_v5  ;;  %v416_v15 = vand.u32 2147483647, %v406_v5  ;;  %vm412_vm11 = vweird.f32 %v406_v5 }
 0x32d   :  { %v419_v17 = vor.u32 1.1754944e-38, %v418_v11  ;;  %vm417_vm13 = vcmp.eq.f32.partialorder %v416_v15, 8.507059e+37 }
 0x331   :  { %v999_v6 = vpop.eup %998 }
 0x332   :  { %v408_v8 = vmul.f32 %v999_v6, %v406_v5  ;;  %vm413_vm10 = vweird.f32 %v999_v6 }
 0x333   :  { %vm414_vm12 = vmor %vm412_vm11, %vm413_vm10 }
 0x334   :  { %v409_v9 = vsub.f32 1.0, %v408_v8  ;;  %v172_v8 = vld [vmem:[%s1411_s0 + $0x3] sm:$0x1] }
 0x336   :  { %v410_v13 = vmul.f32 %v999_v6, %v409_v9  ;;  %v173_v9 = vld [vmem:[%s1411_s0 + $0xb] sm:$0x1] }
 0x337   :  { %v176_v11 = vrot.slane %v173_v9, 7 }
 0x338   :  { %v411_v16 = vadd.f32 %v999_v6, %v410_v13  ;;  %v285_v13 = vld [vmem:[%s1411_s0 + $0xf] sm:$0x1] }
 0x339   :  { %v177_v15 = vsel %vm91_vm0, %v176_v11, %v172_v8 }
 0x33a   :  { %v415_v18 = vsel %vm414_vm12, %v999_v6, %v411_v16  ;;  %954 = vmatmul.msk.f32.vlgmr.msra.gmra.mxu3 %vm93_vm1, %v177_v15  ;;  %v288_v16 = vrot.slane %v285_v13, 7 }
 0x33b   :  { %v420_v21 = vsel %vm417_vm13, %v419_v17, %v415_v18  ;;  %523 = vmatpush.msra.mxu3 %v1179_v7  ;;  %v284_v17 = vld [vmem:[%s1411_s0 + $0x7] sm:$0x1] }
 0x33c   :  { %v422_v22 = vmul.f32 %v420_v21, %v1225_v24  ;;  %v289_v18 = vsel %vm91_vm0, %v288_v16, %v284_v17 }
 0x33d   :  { %524 = vmatpush.msra.mxu3 %v1186_v10 }
 0x33e   :  { %v423_v23 = vadd.f32 %v422_v22, %v1230_v40 }
 0x33f   :  { %525 = vmatpush.msra.mxu3 %v1195_v12 }
 0x340   :  { %426 = vrot.lane.b32.xlu2 %v423_v23, %s1100_s3  ;;  %v424_v27 = vmul.f32 %v423_v23, %v369_v48 }
 0x341   :  { %526 = vmatpush.msra.mxu3 %v1203_v14 }
 0x342   :  { %958 = vmatmul.msk.f32.vlgmr.msrb.gmra.mxu3 %vm93_vm1, %v289_v18 }
 0x343   :  { %783 = vmatpush.msrb.mxu3 %v1179_v7 }
 0x345   :  { %784 = vmatpush.msrb.mxu3 %v1186_v10 }
 0x347   :  { %785 = vmatpush.msrb.mxu3 %v1195_v12 }
 0x349   :  { %786 = vmatpush.msrb.mxu3 %v1203_v14 }
 0x39a   :  { %v427_v25 = vpop.permute.xlu2 %426 }
 0x39b   :  { %v429_v26 = vmul.f32 %v427_v25, %v423_v23 }
 0x39d   :  { %431 = vrot.lane.b32.xlu2 %v429_v26, %s1101_s21 }
 0x3bd   :  { %v197_v25 = vpop.f32.mrf.mxu3 }
 0x3c5   :  { %v1333_v26 = vpop.f32.mrf.mxu3 }
 0x3f7   :  { %v432_v28 = vpop.permute.xlu2 %431 }
 0x3f8   :  { %v434_v29 = vadd.f32 %v432_v28, %v424_v27  ;;  %v198_v27 = vadd.f32 %v1216_v20, %v197_v25 }
 0x3fa   :  { %1000 = vtanh.f32 %v434_v29 }
 0x400   :  { %v1001_v30 = vpop.eup %1000 }
 0x401   :  { %437 = vrot.lane.b32.xlu0 %v1001_v30, %s1100_s3 }
 0x473   :  { %v438_v39 = vpop.permute.xlu0 %437 }
 0x474   :  { %v440_v41 = vmul.f32 %v438_v39, %v423_v23 }
 0x476   :  { %442 = vrot.lane.b32.xlu1 %v440_v41, %s1101_s21 }
 0x4e8   :  { %v443_v42 = vpop.permute.xlu1 %442 }
 0x4e9   :  { %962 = vmatmul.msk.f32.vlgmr.msra.gmra.mxu2 %vm312_vm9, %v443_v42 }
 0x56c   :  { %v463_v46 = vpop.f32.mrf.mxu2 }
 0x56d   :  { %v466_v47 = vadd.f32 %v463_v46, %v170_v45 }
 0x56f   :  { %v467_v48 = vmul.f32 %v466_v47, %v1225_v24 }
 0x571   :  { %v963_v49 = vmul.f32 -1.442695, %v467_v48 }
 0x573   :  { %1002 = vpow2.f32 %v963_v49 }
 0x579   :  { %v1003_v50 = vpop.eup %1002 }
 0x57a   :  { %v471_v51 = vadd.f32 1.0, %v1003_v50 }
 0x57c   :  { %1004 = vrcp.f32 %v471_v51  ;;  %v483_v55 = vand.u32 2147483648, %v471_v51  ;;  %v481_v57 = vand.u32 2147483647, %v471_v51  ;;  %vm477_vm15 = vweird.f32 %v471_v51 }
 0x57e   :  { %v484_v59 = vor.u32 1.1754944e-38, %v483_v55  ;;  %vm482_vm3 = vcmp.eq.f32.partialorder %v481_v57, 8.507059e+37 }
 0x582   :  { %v1005_v52 = vpop.eup %1004 }
 0x583   :  { %v473_v53 = vmul.f32 %v1005_v52, %v471_v51  ;;  %vm478_vm14 = vweird.f32 %v1005_v52 }
 0x584   :  { %vm479_vm2 = vmor %vm477_vm15, %vm478_vm14 }
 0x585   :  { %v474_v54 = vsub.f32 1.0, %v473_v53  ;;  %v226_v53 = vadd.f32 %v1216_v20, %v1211_v19 }
 0x587   :  { %v475_v56 = vmul.f32 %v1005_v52, %v474_v54 }
 0x589   :  { %v476_v58 = vadd.f32 %v1005_v52, %v475_v56 }
 0x58b   :  { %v480_v60 = vsel %vm479_vm2, %v1005_v52, %v476_v58 }
 0x58c   :  { %v485_v61 = vsel %vm482_vm3, %v484_v59, %v480_v60 }
 0x58d   :  { %v487_v63 = vmul.f32 %v485_v61, %v1225_v24 }
 0x58f   :  { %v488_v0 = vadd.f32 %v487_v63, %v1230_v40 }
 0x591   :  { %491 = vrot.lane.b32.xlu2 %v488_v0, %s1100_s3  ;;  %v489_v3 = vmul.f32 %v488_v0, %v434_v29 }
 0x5eb   :  { %v492_v1 = vpop.permute.xlu2 %491 }
 0x5ec   :  { %v494_v2 = vmul.f32 %v492_v1, %v488_v0 }
 0x5ee   :  { %496 = vrot.lane.b32.xlu0 %v494_v2, %s1101_s21 }
 0x660   :  { %v497_v4 = vpop.permute.xlu0 %496 }
 0x661   :  { %v499_v5 = vadd.f32 %v497_v4, %v489_v3 }
 0x663   :  { %1006 = vtanh.f32 %v499_v5 }
 0x669   :  { %v1007_v6 = vpop.eup %1006 }
 0x66a   :  { %502 = vrot.lane.b32.xlu1 %v1007_v6, %s1100_s3 }
 0x6dc   :  { %v503_v21 = vpop.permute.xlu1 %502 }
 0x6dd   :  { %v505_v22 = vmul.f32 %v503_v21, %v488_v0 }
 0x6df   :  { %507 = vrot.lane.b32.xlu2 %v505_v22, %s1101_s21 }
 0x739   :  { %v508_v23 = vpop.permute.xlu2 %507 }
 0x73a   :  { %964 = vmatmul.msk.f32.vlgmr.msra.gmra.mxu3 %vm312_vm9, %v508_v23  ;;  %v254_v23 = vadd.f32 %v1216_v20, %v1263_v62 }
 0x7bd   :  { %v528_v28 = vpop.f32.mrf.mxu3 }
 0x7be   :  { %v531_v7 = vadd.f32 %v528_v28, %v198_v27 }
 0x7c0   :  { %v532_v10 = vmul.f32 %v531_v7, %v1225_v24 }
 0x7c2   :  { %v965_v29 = vmul.f32 -1.442695, %v532_v10 }
 0x7c4   :  { %1008 = vpow2.f32 %v965_v29 }
 0x7ca   :  { %v1009_v12 = vpop.eup %1008 }
 0x7cb   :  { %v536_v14 = vadd.f32 1.0, %v1009_v12 }
 0x7cd   :  { %1010 = vrcp.f32 %v536_v14  ;;  %v548_v33 = vand.u32 2147483648, %v536_v14  ;;  %v546_v35 = vand.u32 2147483647, %v536_v14  ;;  %vm542_vm4 = vweird.f32 %v536_v14 }
 0x7cf   :  { %v549_v37 = vor.u32 1.1754944e-38, %v548_v33  ;;  %vm547_vm6 = vcmp.eq.f32.partialorder %v546_v35, 8.507059e+37 }
 0x7d3   :  { %v1011_v30 = vpop.eup %1010 }
 0x7d4   :  { %v538_v31 = vmul.f32 %v1011_v30, %v536_v14  ;;  %vm543_vm0 = vweird.f32 %v1011_v30 }
 0x7d5   :  { %vm544_vm5 = vmor %vm542_vm4, %vm543_vm0 }
 0x7d6   :  { %v539_v32 = vsub.f32 1.0, %v538_v31 }
 0x7d8   :  { %v540_v34 = vmul.f32 %v1011_v30, %v539_v32 }
 0x7da   :  { %v541_v36 = vadd.f32 %v1011_v30, %v540_v34 }
 0x7dc   :  { %v545_v38 = vsel %vm544_vm5, %v1011_v30, %v541_v36 }
 0x7dd   :  { %v550_v39 = vsel %vm547_vm6, %v549_v37, %v545_v38 }
 0x7de   :  { %v552_v41 = vmul.f32 %v550_v39, %v1225_v24 }
 0x7e0   :  { %v553_v42 = vadd.f32 %v552_v41, %v1230_v40 }
 0x7e2   :  { %556 = vrot.lane.b32.xlu0 %v553_v42, %s1100_s3  ;;  %v554_v46 = vmul.f32 %v553_v42, %v499_v5 }
 0x854   :  { %v557_v43 = vpop.permute.xlu0 %556 }
 0x855   :  { %v559_v45 = vmul.f32 %v557_v43, %v553_v42 }
 0x857   :  { %561 = vrot.lane.b32.xlu1 %v559_v45, %s1101_s21 }
 0x8c9   :  { %v562_v47 = vpop.permute.xlu1 %561 }
 0x8ca   :  { %v564_v48 = vadd.f32 %v562_v47, %v554_v46 }
 0x8cc   :  { %1012 = vtanh.f32 %v564_v48 }
 0x8d2   :  { %v1013_v49 = vpop.eup %1012 }
 0x8d3   :  { %567 = vrot.lane.b32.xlu2 %v1013_v49, %s1100_s3 }
 0x92d   :  { %v568_v50 = vpop.permute.xlu2 %567 }
 0x92e   :  { %v570_v51 = vmul.f32 %v568_v50, %v553_v42  ;;  %v282_v50 = vadd.f32 %v1216_v20, %v1298_v44 }
 0x930   :  { %572 = vrot.lane.b32.xlu0 %v570_v51, %s1101_s21 }
 0x9a2   :  { %v573_v52 = vpop.permute.xlu0 %572 }
 0x9a3   :  { %966 = vmatmul.msk.f32.vlgmr.msrb.gmra.mxu0 %vm312_vm9, %v573_v52 }
 0xa20   :  { %v593_v54 = vpop.f32.mrf.mxu0 }
 0xa21   :  { %v596_v55 = vadd.f32 %v593_v54, %v226_v53 }
 0xa23   :  { %v597_v56 = vmul.f32 %v596_v55, %v1225_v24 }
 0xa25   :  { %v967_v57 = vmul.f32 -1.442695, %v597_v56 }
 0xa27   :  { %1014 = vpow2.f32 %v967_v57 }
 0xa2d   :  { %v1015_v58 = vpop.eup %1014 }
 0xa2e   :  { %v601_v59 = vadd.f32 1.0, %v1015_v58 }
 0xa30   :  { %1016 = vrcp.f32 %v601_v59  ;;  %v613_v0 = vand.u32 2147483648, %v601_v59  ;;  %v611_v2 = vand.u32 2147483647, %v601_v59  ;;  %vm607_vm8 = vweird.f32 %v601_v59 }
 0xa32   :  { %v614_v19 = vor.u32 1.1754944e-38, %v613_v0  ;;  %vm612_vm11 = vcmp.eq.f32.partialorder %v611_v2, 8.507059e+37 }
 0xa36   :  { %v1017_v60 = vpop.eup %1016 }
 0xa37   :  { %v603_v61 = vmul.f32 %v1017_v60, %v601_v59  ;;  %vm608_vm7 = vweird.f32 %v1017_v60 }
 0xa38   :  { %vm609_vm10 = vmor %vm607_vm8, %vm608_vm7 }
 0xa39   :  { %v604_v63 = vsub.f32 1.0, %v603_v61 }
 0xa3b   :  { %v605_v1 = vmul.f32 %v1017_v60, %v604_v63 }
 0xa3d   :  { %v606_v3 = vadd.f32 %v1017_v60, %v605_v1 }
 0xa3f   :  { %v610_v4 = vsel %vm609_vm10, %v1017_v60, %v606_v3  ;;  %vm864_vm10 = vcmask 123904  }
 0xa40   :  { %v615_v5 = vsel %vm612_vm11, %v614_v19, %v610_v4 }
 0xa41   :  { %v617_v6 = vmul.f32 %v615_v5, %v1225_v24 }
 0xa43   :  { %v618_v8 = vadd.f32 %v617_v6, %v1230_v40 }
 0xa45   :  { %621 = vrot.lane.b32.xlu1 %v618_v8, %s1100_s3  ;;  %v619_v13 = vmul.f32 %v618_v8, %v564_v48 }
 0xab7   :  { %v622_v9 = vpop.permute.xlu1 %621 }
 0xab8   :  { %v624_v11 = vmul.f32 %v622_v9, %v618_v8 }
 0xaba   :  { %626 = vrot.lane.b32.xlu2 %v624_v11, %s1101_s21 }
 0xb14   :  { %v627_v15 = vpop.permute.xlu2 %626 }
 0xb15   :  { %v629_v16 = vadd.f32 %v627_v15, %v619_v13 }
 0xb17   :  { %1018 = vtanh.f32 %v629_v16 }
 0xb1d   :  { %v1019_v17 = vpop.eup %1018 }
 0xb1e   :  { %632 = vrot.lane.b32.xlu0 %v1019_v17, %s1100_s3  ;;  %v310_v17 = vadd.f32 %v1216_v20, %v1333_v26 }
 0xb90   :  { %v633_v18 = vpop.permute.xlu0 %632 }
 0xb91   :  { %v635_v21 = vmul.f32 %v633_v18, %v618_v8 }
 0xb93   :  { %637 = vrot.lane.b32.xlu1 %v635_v21, %s1101_s21 }
 0xc05   :  { %v638_v22 = vpop.permute.xlu1 %637 }
 0xc06   :  { %968 = vmatmul.msk.f32.vlgmr.msrb.gmra.mxu1 %vm312_vm9, %v638_v22 }
 0xc83   :  { %v658_v25 = vpop.f32.mrf.mxu1 }
 0xc84   :  { %v661_v27 = vadd.f32 %v658_v25, %v254_v23 }
 0xc86   :  { %v662_v28 = vmul.f32 %v661_v27, %v1225_v24 }
 0xc88   :  { %v969_v7 = vmul.f32 -1.442695, %v662_v28 }
 0xc8a   :  { %1020 = vpow2.f32 %v969_v7 }
 0xc90   :  { %v1021_v10 = vpop.eup %1020 }
 0xc91   :  { %v666_v29 = vadd.f32 1.0, %v1021_v10 }
 0xc93   :  { %1022 = vrcp.f32 %v666_v29  ;;  %v678_v31 = vand.u32 2147483648, %v666_v29  ;;  %v676_v33 = vand.u32 2147483647, %v666_v29  ;;  %vm672_vm13 = vweird.f32 %v666_v29 }
 0xc95   :  { %v679_v62 = vor.u32 1.1754944e-38, %v678_v31  ;;  %vm677_vm15 = vcmp.eq.f32.partialorder %v676_v33, 8.507059e+37 }
 0xc99   :  { %v1023_v12 = vpop.eup %1022 }
 0xc9a   :  { %v668_v14 = vmul.f32 %v1023_v12, %v666_v29  ;;  %vm673_vm12 = vweird.f32 %v1023_v12 }
 0xc9b   :  { %vm674_vm14 = vmor %vm672_vm13, %vm673_vm12 }
 0xc9c   :  { %v669_v30 = vsub.f32 1.0, %v668_v14 }
 0xc9e   :  { %v670_v32 = vmul.f32 %v1023_v12, %v669_v30 }
 0xca0   :  { %v671_v34 = vadd.f32 %v1023_v12, %v670_v32 }
 0xca2   :  { %v675_v35 = vsel %vm674_vm14, %v1023_v12, %v671_v34  ;;  %vm943_vm14 = vcmask 1024  }
 0xca3   :  { %v680_v36 = vsel %vm677_vm15, %v679_v62, %v675_v35 }
 0xca4   :  { %v682_v37 = vmul.f32 %v680_v36, %v1225_v24 }
 0xca6   :  { %v683_v38 = vadd.f32 %v682_v37, %v1230_v40 }
 0xca8   :  { %686 = vrot.lane.b32.xlu2 %v683_v38, %s1100_s3  ;;  %v684_v42 = vmul.f32 %v683_v38, %v629_v16 }
 0xd02   :  { %v687_v39 = vpop.permute.xlu2 %686 }
 0xd03   :  { %v689_v41 = vmul.f32 %v687_v39, %v683_v38  ;;  %v834_v39 = vld [vmem:[%s1415_s4 + $0x18] sm:$0xff] }
 0xd04   :  { %856 = vmatpush.msra.mxu0 %v834_v39 }
 0xd05   :  { %691 = vrot.lane.b32.xlu0 %v689_v41, %s1101_s21  ;;  %v831_v41 = vld [vmem:[%s1415_s4] sm:$0xff] }
 0xd77   :  { %v692_v43 = vpop.permute.xlu0 %691 }
 0xd78   :  { %v694_v45 = vadd.f32 %v692_v43, %v684_v42 }
 0xd7a   :  { %1024 = vtanh.f32 %v694_v45 }
 0xd80   :  { %v1025_v46 = vpop.eup %1024 }
 0xd81   :  { %697 = vrot.lane.b32.xlu1 %v1025_v46, %s1100_s3  ;;  %v1102_v46 = vmov 2.0  }
 0xdf3   :  { %v698_v47 = vpop.permute.xlu1 %697 }
 0xdf4   :  { %v700_v48 = vmul.f32 %v698_v47, %v683_v38 }
 0xdf6   :  { %702 = vrot.lane.b32.xlu2 %v700_v48, %s1101_s21  ;;  %v986_v48 = vld [vmem:[%s1416_s5] ss:$0 sm:$0xff] }
 0xe50   :  { %v703_v49 = vpop.permute.xlu2 %702 }
 0xe51   :  { %970 = vmatmul.msk.f32.vlgmr.msrb.gmra.mxu2 %vm312_vm9, %v703_v49 }
 0xed4   :  { %v723_v51 = vpop.f32.mrf.mxu2 }
 0xed5   :  { %v726_v52 = vadd.f32 %v723_v51, %v282_v50 }
 0xed7   :  { %v727_v53 = vmul.f32 %v726_v52, %v1225_v24 }
 0xed9   :  { %v971_v54 = vmul.f32 -1.442695, %v727_v53 }
 0xedb   :  { %1026 = vpow2.f32 %v971_v54 }
 0xee1   :  { %v1027_v55 = vpop.eup %1026 }
 0xee2   :  { %v731_v56 = vadd.f32 1.0, %v1027_v55 }
 0xee4   :  { %1028 = vrcp.f32 %v731_v56  ;;  %v743_v60 = vand.u32 2147483648, %v731_v56  ;;  %v741_v63 = vand.u32 2147483647, %v731_v56  ;;  %vm737_vm3 = vweird.f32 %v731_v56 }
 0xee6   :  { %v744_v44 = vor.u32 1.1754944e-38, %v743_v60  ;;  %vm742_vm4 = vcmp.eq.f32.partialorder %v741_v63, 8.507059e+37 }
 0xeea   :  { %v1029_v57 = vpop.eup %1028 }
 0xeeb   :  { %v733_v58 = vmul.f32 %v1029_v57, %v731_v56  ;;  %vm738_vm2 = vweird.f32 %v1029_v57 }
 0xeec   :  { %vm739_vm0 = vmor %vm737_vm3, %vm738_vm2 }
 0xeed   :  { %v734_v59 = vsub.f32 1.0, %v733_v58 }
 0xeef   :  { %v735_v61 = vmul.f32 %v1029_v57, %v734_v59 }
 0xef1   :  { %v736_v0 = vadd.f32 %v1029_v57, %v735_v61 }
 0xef3   :  { %v740_v1 = vsel %vm739_vm0, %v1029_v57, %v736_v0 }
 0xef4   :  { %v745_v2 = vsel %vm742_vm4, %v744_v44, %v740_v1 }
 0xef5   :  { %v747_v3 = vmul.f32 %v745_v2, %v1225_v24 }
 0xef7   :  { %v748_v19 = vadd.f32 %v747_v3, %v1230_v40 }
 0xef9   :  { %751 = vrot.lane.b32.xlu0 %v748_v19, %s1100_s3  ;;  %v749_v6 = vmul.f32 %v748_v19, %v694_v45 }
 0xf6b   :  { %v752_v4 = vpop.permute.xlu0 %751 }
 0xf6c   :  { %v754_v5 = vmul.f32 %v752_v4, %v748_v19 }
 0xf6e   :  { %756 = vrot.lane.b32.xlu1 %v754_v5, %s1101_s21 }
 0xfe0   :  { %v757_v8 = vpop.permute.xlu1 %756 }
 0xfe1   :  { %v759_v9 = vadd.f32 %v757_v8, %v749_v6  ;;  %v914_v6 = vld [vmem:[#allocation5 + $0x8] sm:$0xff] }
 0xfe2   :  { %932 = vmatpush.msra.mxu1 %v914_v6 }
 0xfe3   :  { %1030 = vtanh.f32 %v759_v9 }
 0xfe9   :  { %v1031_v11 = vpop.eup %1030 }
 0xfea   :  { %762 = vrot.lane.b32.xlu2 %v1031_v11, %s1100_s3 }
0x1044   :  { %v763_v13 = vpop.permute.xlu2 %762 }
0x1045   :  { %v765_v15 = vmul.f32 %v763_v13, %v748_v19 }
0x1047   :  { %767 = vrot.lane.b32.xlu0 %v765_v15, %s1101_s21 }
0x10b9   :  { %v768_v16 = vpop.permute.xlu0 %767 }
0x10ba   :  { %972 = vmatmul.msk.f32.vlgmr.msrb.gmra.mxu3 %vm312_vm9, %v768_v16 }
0x113d   :  { %v788_v18 = vpop.f32.mrf.mxu3 }
0x113e   :  { %v791_v21 = vadd.f32 %v788_v18, %v310_v17 }
0x1140   :  { %v792_v22 = vmul.f32 %v791_v21, %v1225_v24 }
0x1142   :  { %v973_v23 = vmul.f32 -1.442695, %v792_v22 }
0x1144   :  { %1032 = vpow2.f32 %v973_v23 }
0x114a   :  { %v1033_v25 = vpop.eup %1032 }
0x114b   :  { %v796_v27 = vadd.f32 1.0, %v1033_v25  ;;  %v987_v25 = vld [vmem:[%s1417_s6] ss:$0 sm:$0xff] }
0x114d   :  { %1034 = vrcp.f32 %v796_v27  ;;  %v808_v29 = vand.u32 2147483648, %v796_v27  ;;  %v806_v14 = vand.u32 2147483647, %v796_v27  ;;  %vm802_vm6 = vweird.f32 %v796_v27 }
0x114f   :  { %v809_v20 = vor.u32 1.1754944e-38, %v808_v29  ;;  %vm807_vm8 = vcmp.eq.f32.partialorder %v806_v14, 8.507059e+37  ;;  %v989_v14 = vld [vmem:[#allocation2] ss:$0 sm:$0xff] }
0x1153   :  { %v1035_v28 = vpop.eup %1034 }
0x1154   :  { %v798_v7 = vmul.f32 %v1035_v28, %v796_v27  ;;  %vm803_vm5 = vweird.f32 %v1035_v28 }
0x1155   :  { %vm804_vm7 = vmor %vm802_vm6, %vm803_vm5 }
0x1156   :  { %v799_v10 = vsub.f32 1.0, %v798_v7  ;;  %v988_v7 = vld [vmem:[%s1418_s7] ss:$0 sm:$0xff] }
0x1158   :  { %v800_v12 = vmul.f32 %v1035_v28, %v799_v10 }
0x115a   :  { %v801_v30 = vadd.f32 %v1035_v28, %v800_v12 }
0x115c   :  { %v805_v26 = vsel %vm804_vm7, %v1035_v28, %v801_v30 }
0x115d   :  { %v810_v31 = vsel %vm807_vm8, %v809_v20, %v805_v26 }
0x115e   :  { %v812_v32 = vmul.f32 %v810_v31, %v1225_v24  ;;  %v833_v24 = vld [vmem:[%s1415_s4 + $0x10] sm:$0xff] }
0x115f   :  { %857 = vmatpush.msra.mxu0 %v833_v24 }
0x1160   :  { %v813_v33 = vadd.f32 %v812_v32, %v1230_v40  ;;  %v832_v40 = vld [vmem:[%s1415_s4 + $0x8] sm:$0xff] }
0x1161   :  { %858 = vmatpush.msra.mxu0 %v832_v40 }
0x1162   :  { %816 = vrot.lane.b32.xlu1 %v813_v33, %s1100_s3  ;;  %v814_v35 = vmul.f32 %v813_v33, %v759_v9  ;;  %v913_v9 = vld [vmem:[#allocation5] sm:$0xff] }
0x1163   :  { %859 = vmatpush.msra.mxu0 %v831_v41  ;;  %933 = vmatpush.msra.mxu1 %v913_v9 }
0x11d4   :  { %v817_v34 = vpop.permute.xlu1 %816 }
0x11d5   :  { %v819_v62 = vmul.f32 %v817_v34, %v813_v33 }
0x11d7   :  { %821 = vrot.lane.b32.xlu2 %v819_v62, %s1101_s21 }
0x1231   :  { %v822_v36 = vpop.permute.xlu2 %821 }
0x1232   :  { %v824_v37 = vadd.f32 %v822_v36, %v814_v35 }
0x1234   :  { %1036 = vtanh.f32 %v824_v37 }
0x1235   :  { %1038 = vrcp.f32 %v1102_v46 }
0x123a   :  { %v1037_v38 = vpop.eup %1036 }
0x123b   :  { %827 = vrot.lane.b32.xlu0 %v1037_v38, %s1100_s3  ;;  %v1039_v47 = vpop.eup %1038 }
0x123c   :  { %v873_v49 = vmul.f32 2.0, %v1039_v47 }
0x123e   :  { %v874_v52 = vsub.f32 1.0, %v873_v49 }
0x1240   :  { %v875_v55 = vmul.f32 %v1039_v47, %v874_v52 }
0x1242   :  { %v876_v58 = vadd.f32 %v1039_v47, %v875_v55 }
0x12ad   :  { %v828_v42 = vpop.permute.xlu0 %827 }
0x12ae   :  { %v830_v43 = vmul.f32 %v828_v42, %v813_v33 }
0x12b0   :  { %840 = vrot.lane.b32.xlu1 %v830_v43, %s1101_s21 }
0x1322   :  { %v841_v45 = vpop.permute.xlu1 %840 }
0x1323   :  { %974 = vmatmul.msk.f32.vlgmr.msra.gmra.mxu0 %vm312_vm9, %v841_v45  ;;  %vm877_vm9 = vweird.f32 %v1039_v47 }
0x1324   :  { %v878_v61 = vsel %vm877_vm9, %v1039_v47, %v876_v58 }
0x13a0   :  { %v861_v50 = vpop.f32.mrf.mxu0 }
0x13a1   :  { %v862_v51 = vadd.f32 %v986_v48, %v861_v50 }
0x13a3   :  { %v865_v53 = vsel %vm864_vm10, %v862_v51, 0.0 }
0x13a4   :  { %v866_v54 = vrot.slane %v865_v53, 4 }
0x13a6   :  { %v867_v56 = vadd.f32 %v866_v54, %v865_v53 }
0x13a8   :  { %v868_v57 = vrot.slane %v867_v56, 2 }
0x13aa   :  { %v869_v59 = vadd.f32 %v868_v57, %v867_v56 }
0x13ac   :  { %v870_v60 = vrot.slane %v869_v59, 1 }
0x13ae   :  { %v871_v63 = vadd.f32 %v870_v60, %v869_v59 }
0x13b0   :  { %v879_v0 = vmul.f32 %v878_v61, %v871_v63 }
0x13b2   :  { %v880_v44 = vsub.f32 %v862_v51, %v879_v0 }
0x13b4   :  { %v881_v1 = vmul.f32 %v880_v44, %v880_v44 }
0x13b6   :  { %v882_v2 = vsel %vm864_vm10, %v881_v1, 0.0 }
0x13b7   :  { %v883_v3 = vrot.slane %v882_v2, 4 }
0x13b9   :  { %v884_v19 = vadd.f32 %v883_v3, %v882_v2 }
0x13bb   :  { %v885_v4 = vrot.slane %v884_v19, 2 }
0x13bd   :  { %v886_v5 = vadd.f32 %v885_v4, %v884_v19 }
0x13bf   :  { %v887_v8 = vrot.slane %v886_v5, 1 }
0x13c1   :  { %v888_v11 = vadd.f32 %v887_v8, %v886_v5 }
0x13c3   :  { %v889_v13 = vmul.f32 %v888_v11, %v878_v61 }
0x13c5   :  { %v890_v15 = vadd.f32 1e-05, %v889_v13 }
0x13c7   :  { %1040 = vrsqrt.f32 %v890_v15  ;;  %vm897_vm12 = vweird.f32 %v890_v15 }
0x13cd   :  { %v1041_v16 = vpop.eup %1040 }
0x13ce   :  { %v892_v17 = vmul.f32 %v1041_v16, %v890_v15  ;;  %vm898_vm11 = vweird.f32 %v1041_v16 }
0x13cf   :  { %vm899_vm13 = vmor %vm897_vm12, %vm898_vm11 }
0x13d0   :  { %v893_v18 = vmul.f32 %v1041_v16, %v892_v17 }
0x13d2   :  { %v894_v21 = vmul.f32 0.5, %v893_v18 }
0x13d4   :  { %v895_v22 = vsub.f32 1.5, %v894_v21 }
0x13d6   :  { %v896_v23 = vmul.f32 %v1041_v16, %v895_v22 }
0x13d8   :  { %v900_v27 = vsel %vm899_vm13, %v1041_v16, %v896_v23 }
0x13d9   :  { %v901_v28 = vmul.f32 %v900_v27, %v880_v44 }
0x13db   :  { %v906_v10 = vmul.f32 %v987_v25, %v901_v28 }
0x13dd   :  { %v911_v29 = vadd.f32 %v988_v7, %v906_v10 }
0x13df   :  { %v912_v12 = vmax.f32 %v911_v29, 0.0 }
0x13e1   :  { %975 = vmatmul.msk.f32.vlgmr.msra.gmra.mxu1 %vm93_vm1, %v912_v12 }
0x145e   :  { %v935_v30 = vpop.f32.mrf.mxu1 }
0x145f   :  { %v942_v20 = vadd.f32 %v989_v14, %v935_v30 }
0x1461   :  { %944 = vst.msk [vmem:[%s1421_s10] sm:$0x3] %vm943_vm14, %v942_v20 }
0x1462   :  { %949 = vsyncpa [#allocation4], 1 }
0x1463   :  { %950 = vsyncpa [#allocation6], 1 }

</bundles_post_ra>
